<compile_context>
chip_gen: v7x
topology: tpu7x:2x2x1
jax: 0.10.0
libtpu: 0.0.40
codegen_flags: <defaults>
</compile_context>

<pallas_src>
import functools

import numpy as np
import jax
import jax.numpy as jnp
from jax import lax
from jax.experimental import pallas as pl
from jax.experimental.pallas import tpu as pltpu


def _ceil_to(n, m):
    return -(-n // m) * m


# ------------------------------------------------------------------ kernel ---
def _fir_kernel(x_ref, b_ref, cxs_ref, wcs_ref, mre_ref, mim_ref, y_ref, *, k, ho):
    """All refs whole-array resident in VMEM (no grid).

    x_ref   : (BP, S)      padded input signals
    b_ref   : (BP, T+1)    FIR coeffs with an appended ones-column (bias fold)
    cxs_ref : (S,  L)      packed rfft matrix for x : cols [0:k)=cos, [ho:ho+k)=-sin
    wcs_ref : (T+1, L)     Linear-adaptor + rfft folded matrix for b (+bias row)
    mre_ref : (k,  L)      ifft rows contracted against Y_re (1/K folded in)
    mim_ref : (k,  L)      ifft rows contracted against Y_im (1/K folded in)
    y_ref   : (BP, L)      packed output: y_re at lanes [0:k), y_im at [ho:ho+k)
    """
    # rfft(x) and Linear(b)+rfft, each a single MXU push producing packed re|im.
    X = jnp.dot(x_ref[...], cxs_ref[...], preferred_element_type=jnp.float32)
    H = jnp.dot(b_ref[...], wcs_ref[...], preferred_element_type=jnp.float32)

    # Static lane slices (compile-time offsets); Mosaic relayouts are a handful
    # of vreg ops — negligible next to the matmuls / constant DMA.
    Xr, Xi = X[:, :k], X[:, ho:ho + k]
    Hr, Hi = H[:, :k], H[:, ho:ho + k]

    # Complex frequency-domain product (VPU).
    Yr = Xr * Hr - Xi * Hi
    Yi = Xr * Hi + Xi * Hr

    # ifft as two thin matmuls against the compact constants (no wide zero rows).
    y = jnp.dot(Yr, mre_ref[...], preferred_element_type=jnp.float32)
    y = y + jnp.dot(Yi, mim_ref[...], preferred_element_type=jnp.float32)
    y_ref[...] = y.astype(y_ref.dtype)


# ---------------------------------------------------------- DFT constants ----
def _rfft_mats(n):
    kk = np.arange(n // 2 + 1)
    nn = np.arange(n)
    ang = 2.0 * np.pi * np.outer(nn, kk) / n          # (n, K), float64
    return np.cos(ang), -np.sin(ang)                  # rfft: exp(-2*pi*i*n*k/N)


def _ifft_mats(k_len):
    kk = np.arange(k_len)
    ang = 2.0 * np.pi * np.outer(kk, kk) / k_len      # (K, K), float64
    return np.cos(ang), np.sin(ang)                   # ifft: exp(+2*pi*i*n*k/K)


# ------------------------------------------------------------------ factory --
def make_frequency_domain_fir_filter(weight, bias, samples, const_dtype=jnp.float32):
    """Build per-(weight, bias, S) constants once; return a jitted apply(x, b).

    weight: (T, T) Linear weight, bias: (T,) Linear bias (torch convention:
    b' = b @ weight.T + bias).  samples: S, length of each input signal.
    """
    weight = np.asarray(weight, np.float64)
    bias_v = np.asarray(bias, np.float64)
    ntaps = weight.shape[0]
    k = samples // 2 + 1
    if ntaps // 2 + 1 != k:
        # The PyTorch module multiplies rfft(x) * rfft(b') elementwise, which
        # implicitly requires matching bin counts (ntaps == S or S-1).
        raise ValueError(f"ntaps//2+1 ({ntaps // 2 + 1}) must equal S//2+1 ({k})")

    # Lane layout: re at [0:k), im at [ho:ho+k), total L lanes (128-multiple).
    kp = _ceil_to(k, 128)
    lp = _ceil_to(2 * k, 128)
    if lp < 2 * kp:
        ho, L = k, lp          # compact packing (saves lanes / constant bytes)
    else:
        ho, L = kp, 2 * kp     # no lane saving -> keep 128-aligned halves

    cx, sx = _rfft_mats(samples)       # (S, k)
    cb, sb = _rfft_mats(ntaps)         # (T, k)
    ic, isn = _ifft_mats(k)            # (k, k)

    # x-path rfft matrix, packed [cos | -sin] at lanes [0:k) / [ho:ho+k).
    cxs = np.zeros((samples, L), np.float64)
    cxs[:, :k] = cx
    cxs[:, ho:ho + k] = sx

    # b-path: fold Linear adaptor (weight.T) and bias (extra ones-row) into rfft.
    wcs = np.zeros((ntaps + 1, L), np.float64)
    wcs[:ntaps, :k] = weight.T @ cb
    wcs[:ntaps, ho:ho + k] = weight.T @ sb
    wcs[ntaps, :k] = bias_v @ cb
    wcs[ntaps, ho:ho + k] = bias_v @ sb

    # Real-form ifft split into the Y_re / Y_im row blocks, 1/K folded in.
    m_re = np.zeros((k, L), np.float64)
    m_re[:, :k] = ic / k
    m_re[:, ho:ho + k] = isn / k
    m_im = np.zeros((k, L), np.float64)
    m_im[:, :k] = -isn / k
    m_im[:, ho:ho + k] = ic / k

    cxs_j = jnp.asarray(cxs, const_dtype)
    wcs_j = jnp.asarray(wcs, const_dtype)
    mre_j = jnp.asarray(m_re, const_dtype)
    mim_j = jnp.asarray(m_im, const_dtype)
    const_bytes = (cxs.size + wcs.size + m_re.size + m_im.size) * \
        jnp.dtype(const_dtype).itemsize

    kernel = functools.partial(_fir_kernel, k=k, ho=ho)
    vmem_spec = pl.BlockSpec(memory_space=pltpu.MemorySpace.VMEM)

    @jax.jit
    def apply(x, b):
        bs = x.shape[0]
        x2 = x.reshape(bs, -1).astype(jnp.float32)
        assert x2.shape[1] == samples, "signal length must match factory `samples`"
        assert b.shape[-1] == ntaps

        bp = _ceil_to(bs, 8)                         # f32 sublane multiple
        x_p = jnp.pad(x2, ((0, bp - bs), (0, 0)))
        b_aug = jnp.concatenate(
            [b.astype(jnp.float32), jnp.ones((bs, 1), jnp.float32)], axis=1)
        b_aug = jnp.pad(b_aug, ((0, bp - bs), (0, 0)))

        io_bytes = 4 * (bp * samples + bp * (ntaps + 1) + bp * L)
        cost = pl.CostEstimate(
            flops=int(2 * bp * L * (samples + ntaps + 1 + 2 * k) + 6 * bp * k),
            transcendentals=0,
            bytes_accessed=int(io_bytes + const_bytes))
        vmem_limit = int(min(max(2 * (io_bytes + const_bytes), 8 << 20), 64 << 20))

        y_packed = pl.pallas_call(
            kernel,
            out_shape=jax.ShapeDtypeStruct((bp, L), jnp.float32),
            in_specs=[vmem_spec] * 6,
            out_specs=vmem_spec,
            compiler_params=pltpu.CompilerParams(vmem_limit_bytes=vmem_limit),
            cost_estimate=cost,
        )(x_p, b_aug, cxs_j, wcs_j, mre_j, mim_j)

        y_re = y_packed[:bs, :k]
        y_im = y_packed[:bs, ho:ho + k]
        return lax.complex(y_re, y_im).astype(jnp.complex64).reshape(bs, 1, k)

    return apply


# ----------------------------------------------------------------- reference -
def _reference_np(x, b, weight, bias):
    x = np.asarray(x, np.float32)
    b = np.asarray(b, np.float32)
    w = np.asarray(weight, np.float32)
    bb = np.asarray(bias, np.float32)
    bs = x.shape[0]
    b_ad = b @ w.T + bb
    X = np.fft.rfft(x.reshape(bs, -1))
    H = np.fft.rfft(b_ad.reshape(bs, -1))
    Y = X * H
    y = np.fft.ifft(Y).reshape(bs, 1, -1)
    return y.astype(np.complex64)


# ----------------------------------------------------------------- main ------
if __name__ == "__main__":
    key = jax.random.PRNGKey(0)
    bs, c, samples = 4, 1, 31
    ntaps = 31                          # num_control_params; rfft bins match x's

    k1, k2, k3, k4 = jax.random.split(key, 4)
    x = jax.random.normal(k1, (bs, c, samples), jnp.float32)
    b = jax.random.normal(k2, (bs, ntaps), jnp.float32)

    # Deterministic Linear params (torch default init style: U(-1/sqrt(in), 1/sqrt(in)))
    lim = 1.0 / np.sqrt(ntaps)
    weight = jax.random.uniform(k3, (ntaps, ntaps), jnp.float32, -lim, lim)
    bias = jax.random.uniform(k4, (ntaps,), jnp.float32, -lim, lim)

    # Constants built once here (hoisted out of the per-call path).
    fir = make_frequency_domain_fir_filter(weight, bias, samples)

    y = jax.block_until_ready(fir(x, b))

    assert y.shape == (bs, 1, samples // 2 + 1)
    assert y.dtype == jnp.complex64

    y_ref = _reference_np(x, b, weight, bias)
    np.testing.assert_allclose(np.asarray(y), y_ref, rtol=2e-4, atol=2e-4)

    print("KERNEL_OK")
</pallas_src>

<mosaic_0001>
module attributes {stable_mosaic.version = 11 : i64} {
  func.func @_fir_kernel(%arg0: memref<8x31xf32, #tpu.memory_space<vmem>>, %arg1: memref<8x32xf32, #tpu.memory_space<vmem>>, %arg2: memref<31x128xf32, #tpu.memory_space<vmem>>, %arg3: memref<32x128xf32, #tpu.memory_space<vmem>>, %arg4: memref<16x128xf32, #tpu.memory_space<vmem>>, %arg5: memref<16x128xf32, #tpu.memory_space<vmem>>, %arg6: memref<8x128xf32, #tpu.memory_space<vmem>>) attributes {dimension_semantics = [], scalar_prefetch = 0 : i64, scratch_operands = 0 : i64, tpu.core_type = #tpu.core_type<tc>} {
    %c0 = arith.constant 0 : index
    %c0_0 = arith.constant 0 : index
    %0 = vector.load %arg0[%c0, %c0_0] : memref<8x31xf32, #tpu.memory_space<vmem>>, vector<8x31xf32>
    %c0_1 = arith.constant 0 : index
    %c0_2 = arith.constant 0 : index
    %1 = vector.load %arg2[%c0_1, %c0_2] : memref<31x128xf32, #tpu.memory_space<vmem>>, vector<31x128xf32>
    %cst = arith.constant dense<0.000000e+00> : vector<8x128xf32>
    %2 = tpu.matmul %0, %1, %cst {dimension_numbers = #tpu.dot_dimension_numbers<[1], [0], [0], [1], [0, 0, 1, 1], [], []>} : vector<8x31xf32>, vector<31x128xf32>, vector<8x128xf32> -> vector<8x128xf32>
    %c0_3 = arith.constant 0 : index
    %c0_4 = arith.constant 0 : index
    %3 = vector.load %arg1[%c0_3, %c0_4] : memref<8x32xf32, #tpu.memory_space<vmem>>, vector<8x32xf32>
    %c0_5 = arith.constant 0 : index
    %c0_6 = arith.constant 0 : index
    %4 = vector.load %arg3[%c0_5, %c0_6] : memref<32x128xf32, #tpu.memory_space<vmem>>, vector<32x128xf32>
    %cst_7 = arith.constant dense<0.000000e+00> : vector<8x128xf32>
    %5 = tpu.matmul %3, %4, %cst_7 {dimension_numbers = #tpu.dot_dimension_numbers<[1], [0], [0], [1], [0, 0, 1, 1], [], []>} : vector<8x32xf32>, vector<32x128xf32>, vector<8x128xf32> -> vector<8x128xf32>
    %6 = vector.extract_strided_slice %2 {offsets = [0, 0], sizes = [8, 16], strides = [1, 1]} : vector<8x128xf32> to vector<8x16xf32>
    %7 = vector.extract_strided_slice %2 {offsets = [0, 16], sizes = [8, 16], strides = [1, 1]} : vector<8x128xf32> to vector<8x16xf32>
    %8 = vector.extract_strided_slice %5 {offsets = [0, 0], sizes = [8, 16], strides = [1, 1]} : vector<8x128xf32> to vector<8x16xf32>
    %9 = vector.extract_strided_slice %5 {offsets = [0, 16], sizes = [8, 16], strides = [1, 1]} : vector<8x128xf32> to vector<8x16xf32>
    %10 = arith.mulf %6, %8 : vector<8x16xf32>
    %11 = arith.mulf %7, %9 : vector<8x16xf32>
    %12 = arith.subf %10, %11 : vector<8x16xf32>
    %13 = arith.mulf %6, %9 : vector<8x16xf32>
    %14 = arith.mulf %7, %8 : vector<8x16xf32>
    %15 = arith.addf %13, %14 : vector<8x16xf32>
    %c0_8 = arith.constant 0 : index
    %c0_9 = arith.constant 0 : index
    %16 = vector.load %arg4[%c0_8, %c0_9] : memref<16x128xf32, #tpu.memory_space<vmem>>, vector<16x128xf32>
    %cst_10 = arith.constant dense<0.000000e+00> : vector<8x128xf32>
    %17 = tpu.matmul %12, %16, %cst_10 {dimension_numbers = #tpu.dot_dimension_numbers<[1], [0], [0], [1], [0, 0, 1, 1], [], []>} : vector<8x16xf32>, vector<16x128xf32>, vector<8x128xf32> -> vector<8x128xf32>
    %c0_11 = arith.constant 0 : index
    %c0_12 = arith.constant 0 : index
    %18 = vector.load %arg5[%c0_11, %c0_12] : memref<16x128xf32, #tpu.memory_space<vmem>>, vector<16x128xf32>
    %cst_13 = arith.constant dense<0.000000e+00> : vector<8x128xf32>
    %19 = tpu.matmul %15, %18, %cst_13 {dimension_numbers = #tpu.dot_dimension_numbers<[1], [0], [0], [1], [0, 0, 1, 1], [], []>} : vector<8x16xf32>, vector<16x128xf32>, vector<8x128xf32> -> vector<8x128xf32>
    %20 = arith.addf %17, %19 : vector<8x128xf32>
    %c0_14 = arith.constant 0 : index
    %c0_15 = arith.constant 0 : index
    %21 = vector.load %arg6[%c0_14, %c0_15] : memref<8x128xf32, #tpu.memory_space<vmem>>, vector<8x128xf32>
    tpu.vector_store %arg6[%c0_14, %c0_15], %20 {strides = array<i32>} : memref<8x128xf32, #tpu.memory_space<vmem>>, vector<8x128xf32>,
    return
  }
}

</mosaic_0001>

<bundles_post_ra>
// kernel: custom-call
= control target key start
LH: loop header
LB: loop body
LE: loop exit
PB: predicated region body
PF: predicated region fallthrough
CT: control target
= control target key end

     0   :  { %s126_s0 = inlined_call_operand.vmem [shape: f32[4,1,16], index: 0, kind: input, shape index: {}]   ;;  %s127_s1 = inlined_call_operand.vmem [shape: f32[4,1,16], index: 1, kind: input, shape index: {}]   ;;  %s128_s2 = inlined_call_operand.hbm [shape: c64[4,1,16], index: 2, kind: output, shape index: {}]  }
   0x1   :  { %s87_s11 = scalar_lea.hbm %s128_s2, 64 }
   0x2   :  { %4 = vsyncpa [#allocation0], 0  ;;  %s5_s14 = sshll.u32 %s126_s0, 4  ;;  %s6_s14 = int_to_ptr.vmem [resolvable:$true] %s5_s14 }
   0x3   :  { %s18_s15 = scalar_lea.vmem %s6_s14, 64  ;;  %p23_p1 = scmp.lt.s32.totalorder %s6_s14, %s6_s14 }
   0x4   :  { %p19_p0 = scmp.ne.s32.totalorder %s6_s14, %s18_s15  ;;  %p24_p2 = scmp.lt.s32.totalorder %s18_s15, %s18_s15 }
   0x6   :  { %p25_p3 = por %p24_p2, %p23_p1 }
   0x8   :  { %p26_p4 = pnand %p25_p3, %p19_p0 }
   0xa   :  { %29 = shalt.err (!%p26_p4)  }
   0xb   :  { %p31_p5 = scmp.ne.s32.totalorder %s128_s2, %s87_s11  ;;  %s32_s0 = scalar_lea.hbm %s128_s2, 128 }
   0xc   :  { %p33_p6 = scmp.lt.u32.totalorder %s32_s0, %s87_s11  ;;  %p34_p7 = scmp.lt.u32.totalorder %s87_s11, %s128_s2 }
   0xe   :  { %p35_p8 = por %p34_p7, %p33_p6 }
  0x10   :  { %p36_p9 = pnand %p35_p8, %p31_p5 }
  0x12   :  { %39 = shalt.err (!%p36_p9)  }
  0x13   :  { %8 = dma.vmem_to_hbm [thread:$0]  %s6_s14, 64, %s128_s2, [#allocation0] }
  0x14   :  { %65 = dma.done.wait [#allocation0], 64  }
  0x15   :  { %66 = vsyncadd [#allocation0], 4294967232 }
  0x16   :  { %10 = vsyncpa [#allocation0], 1 }
  0x17   :  { %11 = vsyncpa [#allocation1], 0  ;;  %s12_s28 = sshll.u32 %s127_s1, 4  ;;  %s13_s28 = int_to_ptr.vmem [resolvable:$true] %s12_s28 }
  0x18   :  { %s40_s29 = scalar_lea.vmem %s13_s28, 64  ;;  %p45_p11 = scmp.lt.s32.totalorder %s13_s28, %s13_s28 }
  0x19   :  { %p41_p10 = scmp.ne.s32.totalorder %s13_s28, %s40_s29  ;;  %p46_p12 = scmp.lt.s32.totalorder %s40_s29, %s40_s29 }
  0x1b   :  { %p47_p13 = por %p46_p12, %p45_p11 }
  0x1d   :  { %p48_p0 = pnand %p47_p13, %p41_p10 }
  0x1f   :  { %51 = shalt.err (!%p48_p0)  }
  0x20   :  { %p53_p1 = scmp.ne.s32.totalorder %s87_s11, %s32_s0  ;;  %p56_p2 = scmp.lt.u32.totalorder %s32_s0, %s32_s0 }
  0x22   :  { %p57_p3 = por %p56_p2, %p34_p7 }
  0x24   :  { %p59_p4 = por %p57_p3, %p33_p6 }
  0x26   :  { %p60_p5 = pnand %p59_p4, %p53_p1 }
  0x28   :  { %63 = shalt.err (!%p60_p5)  }
  0x29   :  { %15 = dma.vmem_to_hbm [thread:$0]  %s13_s28, 64, %s87_s11, [#allocation1] }
  0x2a   :  { %67 = dma.done.wait [#allocation1], 64  }
  0x2b   :  { %68 = vsyncadd [#allocation1], 4294967232 }
  0x2c   :  { %17 = vsyncpa [#allocation1], 1 }

// kernel: apply.1
= control target key start
LH: loop header
LB: loop body
LE: loop exit
PB: predicated region body
PF: predicated region fallthrough
CT: control target
= control target key end

     0   :  { %11 = vsyncpa [#allocation3], 0  ;;  %s685_s0 = inlined_call_operand.vmem [shape: f32[8,31], index: 0, kind: input, shape index: {}]   ;;  %s686_s1 = inlined_call_operand.vmem [shape: f32[8,32], index: 1, kind: input, shape index: {}]   ;;  %s687_s2 = inlined_call_operand.hbm [shape: f32[31,128], index: 2, kind: input, shape index: {}]   ;;  %s688_s3 = inlined_call_operand.vmem [shape: f32[32,128], index: 3, kind: input, shape index: {}]   ;;  %s689_s4 = inlined_call_operand.hbm [shape: f32[16,128], index: 4, kind: input, shape index: {}]   ;;  %s690_s5 = inlined_call_operand.hbm [shape: f32[16,128], index: 5, kind: input, shape index: {}]   ;;  %s691_s6 = inlined_call_operand.vmem [shape: f32[8,128], index: 6, kind: output, shape index: {}]  }
   0x1   :  { %12 = vsyncpa [#allocation5], 0  ;;  %s562_s21 = smov [#allocation4]   ;;  %s563_s23 = smov [#allocation2]  }
   0x2   :  { %s36_s22 = sshll.u32 %s562_s21, 4  ;;  %s22_s24 = sshll.u32 %s563_s23, 4  ;;  %s37_s22 = int_to_ptr.vmem [resolvable:$true] %s36_s22  ;;  %s608_s24 = int_to_ptr.vmem [resolvable:$true] %s22_s24 }
   0x3   :  { %s492_s27 = scalar_lea.hbm %s689_s4, 256 }
   0x4   :  { %p493_p0 = scmp.ne.s32.totalorder %s689_s4, %s492_s27  ;;  %p496_p1 = scmp.lt.u32.totalorder %s492_s27, %s689_s4 }
   0x6   :  { %p498_p2 = pnand %p496_p1, %p493_p0 }
   0x8   :  { %501 = shalt.err (!%p498_p2)
}
   0x9   :  { %s502_s8 = scalar_lea.vmem %s37_s22, 256  ;;  %p507_p4 = scmp.lt.s32.totalorder %s37_s22, %s37_s22 }
   0xa   :  { %p503_p3 = scmp.ne.s32.totalorder %s37_s22, %s502_s8  ;;  %p508_p5 = scmp.lt.s32.totalorder %s502_s8, %s502_s8 }
   0xc   :  { %p509_p6 = por %p508_p5, %p507_p4 }
   0xe   :  { %p510_p7 = pnand %p509_p6, %p503_p3 }
  0x10   :  { %513 = shalt.err (!%p510_p7)
}
  0x11   :  { %s564_s9 = smov 128   ;;  %s565_s10 = smov 8  }
  0x12   :  { %42 = dma.hbm_to_vmem [thread:$0]  %s689_s4, 256, %s37_s22, [#allocation5], %s564_s9, %s564_s9, %s565_s10  }
  0x13   :  { %s514_s15 = scalar_lea.hbm %s687_s2, 512 }
  0x14   :  { %p515_p8 = scmp.ne.s32.totalorder %s687_s2, %s514_s15  ;;  %p518_p9 = scmp.lt.u32.totalorder %s514_s15, %s687_s2 }
  0x16   :  { %p520_p10 = pnand %p518_p9, %p515_p8 }
  0x18   :  { %523 = shalt.err (!%p520_p10)
}
  0x19   :  { %s524_s20 = scalar_lea.vmem %s608_s24, 512  ;;  %p529_p12 = scmp.lt.s32.totalorder %s608_s24, %s608_s24 }
  0x1a   :  { %p525_p11 = scmp.ne.s32.totalorder %s608_s24, %s524_s20  ;;  %p530_p13 = scmp.lt.s32.totalorder %s524_s20, %s524_s20 }
  0x1c   :  { %p531_p0 = por %p530_p13, %p529_p12 }
  0x1e   :  { %p532_p1 = pnand %p531_p0, %p525_p11 }
  0x20   :  { %535 = shalt.err (!%p532_p1)
}
  0x21   :  { %28 = dma.hbm_to_vmem [thread:$0]  %s687_s2, 512, %s608_s24, [#allocation3], %s564_s9, %s564_s9, %s565_s10  }
  0x22   :  { %s566_s22 = smov [#allocation6]   ;;  %s536_s27 = scalar_lea.hbm %s690_s5, 256 }
  0x23   :  { %s48_s23 = sshll.u32 %s566_s22, 4  ;;  %p537_p2 = scmp.ne.s32.totalorder %s690_s5, %s536_s27  ;;  %s49_s23 = int_to_ptr.vmem [resolvable:$true] %s48_s23 }
  0x24   :  { %p540_p3 = scmp.lt.u32.totalorder %s536_s27, %s690_s5 }
  0x26   :  { %p542_p4 = pnand %p540_p3, %p537_p2 }
  0x28   :  { %545 = shalt.err (!%p542_p4)
}
  0x29   :  { %s546_s8 = scalar_lea.vmem %s49_s23, 256  ;;  %p551_p6 = scmp.lt.s32.totalorder %s49_s23, %s49_s23 }
  0x2a   :  { %p547_p5 = scmp.ne.s32.totalorder %s49_s23, %s546_s8  ;;  %p552_p7 = scmp.lt.s32.totalorder %s546_s8, %s546_s8 }
  0x2c   :  { %p553_p8 = por %p552_p7, %p551_p6 }
  0x2e   :  { %p554_p9 = pnand %p553_p8, %p547_p5 }
  0x30   :  { %557 = shalt.err (!%p554_p9)
}
  0x31   :  { %54 = dma.hbm_to_vmem [thread:$0]  %s690_s5, 256, %s49_s23, [#allocation5], %s564_s9, %s564_s9, %s565_s10  }
  0x32   :  { %558 = dma.done.wait [#allocation3], 512  }
  0x33   :  { %559 = vsyncadd [#allocation3], 4294966784 }
  0x34   :  { %560 = dma.done.wait [#allocation5], 512  }
  0x35   :  { %561 = vsyncadd [#allocation5], 4294966784  ;;  %v567_v0 = vmov 0.0|0.0   ;;  %vm568_vm0 = vmmov 0   ;;  %v569_v1 = vmov 0.0   ;;  %v65_v2 = vld [vmem:[#allocation2] sm:$0xff] }
  0x36   :  { %461 = vmatprep.subr.bf16.mxu0 %v567_v0  ;;  %468 = vmatprep.subr.bf16.mxu1 %v567_v0  ;;  %v66_v3 = vld [vmem:[#allocation2 + $0x8] sm:$0xff]  ;;  %v148_v4 = vld [vmem:[%s688_s3] sm:$0xff]  ;;  %v67_v7 = vld [vmem:[#allocation2 + $0x10] sm:$0xff]  ;;  %vm73_vm1 = vcmask 1046528   ;;  %vm570_vm2 = vmmov 1   ;;  %vm69_vm4 = vcmask 252928  }
  0x37   :  { %433 = vmatprep.mubr.msk.f32.mxu0 %vm568_vm0, %v569_v1  ;;  %444 = vmatprep.mubr.msk.f32.mxu1 %vm568_vm0, %v569_v1  ;;  %v462_v5 = vpack.c.bf16 %v66_v3, %v65_v2  ;;  %v149_v6 = vld [vmem:[%s688_s3 + $0x8] sm:$0xff]  ;;  %v68_v8 = vld [vmem:[#allocation2 + $0x18] sm:$0x7f]  ;;  %v150_v10 = vld [vmem:[%s688_s3 + $0x10] sm:$0xff]  ;;  %vm152_vm5 = vcmask 261120   ;;  %vm250_vm6 = vcmask 130048  }
  0x38   :  { %v469_v9 = vpack.c.bf16 %v149_v6, %v148_v4  ;;  %v151_v11 = vld [vmem:[%s688_s3 + $0x18] sm:$0xff]  ;;  %v465_v12 = vpack.c.bf16 %v68_v8, %v67_v7  ;;  %vm466_vm3 = vmpackc.low %vm73_vm1, %vm570_vm2  ;;  %v64_v14 = vld [vmem:[%s685_s0] sm:$0xff]  ;;  %s571_s0 = smov 16  }
  0x39   :  { %463 = vmatpush3.bf16.msra.mxu0 %v462_v5  ;;  %v472_v13 = vpack.c.bf16 %v151_v11, %v150_v10  ;;  %v147_v15 = vld [vmem:[%s686_s1] sm:$0xff]  ;;  %v247_v17 = vld [vmem:[#allocation4 + $0x8] sm:$0xff]  ;;  %v248_v19 = vld [vmem:[#allocation6] sm:$0xff]  ;;  %s572_s1 = smov 112  }
  0x3a   :  { %470 = vmatpush3.bf16.msra.mxu1 %v469_v9  ;;  %464 = vmatprep.subr.bf16.mxu0 %v567_v0  ;;  %v246_v16 = vld [vmem:[#allocation4] sm:$0xff]  ;;  %v249_v20 = vld [vmem:[#allocation6 + $0x8] sm:$0xff] }
  0x3b   :  { %471 = vmatprep.subr.bf16.mxu1 %v567_v0  ;;  %v478_v18 = vpack.c.bf16 %v247_v17, %v246_v16  ;;  %v475_v21 = vpack.c.bf16 %v249_v20, %v248_v19 }
  0x3d   :  { %467 = vmatpush3.bf16.msk.msra.mxu0 %vm466_vm3, %v465_v12 }
  0x3e   :  { %473 = vmatpush3.bf16.msra.mxu1 %v472_v13  ;;  %477 = vmatprep.subr.bf16.mxu0 %v567_v0 }
  0x3f   :  { %474 = vmatprep.subr.bf16.mxu1 %v567_v0 }
  0x40   :  { %434 = vmatmul.mubr.msk.f32.vlgmr.msra.gmra.mrb[0].mxu0 %vm69_vm4, %v64_v14 }
  0x41   :  { %445 = vmatmul.mubr.msk.f32.vlgmr.msra.gmra.mrb[0].mxu1 %vm152_vm5, %v147_v15  ;;  %458 = vmatprep.mubr.msk.f32.mxu0 %vm568_vm0, %v569_v1 }
  0x42   :  { %451 = vmatprep.mubr.msk.f32.mxu1 %vm568_vm0, %v569_v1  ;;  %479 = vmatpush3.bf16.msra.mxu0 %v478_v18 }
  0x43   :  { %476 = vmatpush3.bf16.msra.mxu1 %v475_v21 }
 0x113   :  { %v143_v22 = vpop.f32.mrb[0].mxu0 }
 0x114   :  { %v222_v23 = vpop.f32.mrb[0].mxu1  ;;  %v435_v24 = vpop.f32.mrb[1].mxu0 }
 0x115   :  { %237 = vrot.lane.b32.xlu0 %v222_v23, %s571_s0  ;;  %v446_v25 = vpop.f32.mrb[1].mxu1  ;;  %v226_v26 = vmul.f32 %v222_v23, %v143_v22 }
 0x117   :  { %228 = vrot.lane.b32.xlu1 %v226_v26, %s572_s1 }
 0x119   :  { %233 = vrot.lane.b32.xlu0 %v222_v23, %s572_s1 }
 0x187   :  { %v238_v27 = vpop.permute.xlu0 %237 }
 0x188   :  { %v240_v28 = vmul.f32 %v238_v27, %v143_v22 }
 0x189   :  { %v229_v29 = vpop.permute.xlu1 %228 }
 0x18a   :  { %v231_v30 = vsub.f32 %v226_v26, %v229_v29  ;;  %242 = vrot.lane.b32.xlu1 %v240_v28, %s572_s1 }
 0x18b   :  { %v234_v31 = vpop.permute.xlu0 %233 }
 0x18c   :  { %459 = vmatmul.mubr.msk.f32.vlgmr.msra.gmra.mrb[2].mxu0 %vm250_vm6, %v231_v30  ;;  %v236_v32 = vmul.f32 %v234_v31, %v143_v22 }
 0x1fc   :  { %v243_v33 = vpop.permute.xlu1 %242 }
 0x1fd   :  { %v245_v34 = vadd.f32 %v243_v33, %v236_v32 }
 0x1ff   :  { %452 = vmatmul.mubr.msk.f32.vlgmr.msra.gmra.mrb[2].mxu1 %vm250_vm6, %v245_v34 }
 0x25f   :  { %v393_v35 = vpop.f32.mrb[2].mxu0 }
 0x260   :  { %v460_v36 = vpop.f32.mrb[3].mxu0 }
 0x2d2   :  { %v320_v37 = vpop.f32.mrb[2].mxu1 }
 0x2d3   :  { %v394_v38 = vadd.f32 %v393_v35, %v320_v37  ;;  %v453_v39 = vpop.f32.mrb[3].mxu1 }
 0x2d5   :  { %397 = vst [vmem:[%s691_s6] sm:$0xff] %v394_v38 }
 0x2d6   :  { %402 = vsyncpa [#allocation3], 1 }
 0x2d7   :  { %403 = vsyncpa [#allocation5], 1 }

</bundles_post_ra>
